<compile_context>
chip_gen: v5e
topology: v5e:2x2
jax: 0.10.0
libtpu: 0.0.40
codegen_flags: <defaults>
</compile_context>

<pallas_src>
import functools

import jax
import jax.numpy as jnp
import numpy as np
from jax.experimental import pallas as pl
from jax.experimental.pallas import tpu as pltpu


def _window_attn_kernel(*refs, has_mask, bw, whww, dim, mxu_dtype, approx):
    if has_mask:
        mask_ref, x_ref, wqkv_ref, bqkv_ref, pw_ref, pb_ref, o_ref = refs
    else:
        x_ref, wqkv_ref, bqkv_ref, pw_ref, pb_ref, o_ref = refs

    rows = bw * whww
    # (BW, WhWw, dim) -> (BW*WhWw, dim): one big projection matmul on the MXU.
    x2d = x_ref[...].reshape(rows, dim).astype(mxu_dtype)

    # Fused QKV projection (scale already folded into the q slice of wqkv/bqkv).
    qkv = jnp.dot(x2d, wqkv_ref[...],
                  preferred_element_type=jnp.float32) + bqkv_ref[0]
    qkv = qkv.reshape(bw, whww, 3 * dim)
    q = qkv[:, :, 0 * dim:1 * dim].astype(mxu_dtype)
    k = qkv[:, :, 1 * dim:2 * dim].astype(mxu_dtype)
    v = qkv[:, :, 2 * dim:3 * dim].astype(mxu_dtype)

    # Per-window scores, contracting channel dims directly (no k transpose).
    attn = jnp.einsum('bqd,bkd->bqk', q, k,
                      preferred_element_type=jnp.float32)          # (BW, WhWw, WhWw)
    if has_mask:
        attn = attn + mask_ref[...]

    # Numerically-stable softmax (f32).
    attn = attn - jnp.max(attn, axis=-1, keepdims=True)
    p = jnp.exp(attn)
    denom = jnp.sum(p, axis=-1, keepdims=True)
    if approx:
        p = p * pl.reciprocal(denom, approx=True)
    else:
        p = p / denom

    # attn @ v per window, then fused output projection over all windows.
    out = jnp.einsum('bqk,bkd->bqd', p.astype(mxu_dtype), v,
                     preferred_element_type=jnp.float32)           # (BW, WhWw, dim)
    out2d = out.reshape(rows, dim).astype(mxu_dtype)
    out2d = jnp.dot(out2d, pw_ref[...],
                    preferred_element_type=jnp.float32) + pb_ref[0]
    o_ref[...] = out2d.reshape(bw, whww, dim).astype(o_ref.dtype)


def _pick_block_windows(Bnw, WhWw, nw, target_rows=512):
    """Largest BW that is a multiple of nw, divides Bnw, and keeps
    BW*WhWw near `target_rows` (fills the MXU / amortizes step overhead)."""
    bw_target = max(nw, target_rows // max(WhWw, 1))
    m = Bnw // nw
    best = nw
    for d in range(1, m + 1):
        if m % d == 0 and nw * d <= bw_target:
            best = nw * d
    return best


def window_attention(fmap, params, mask=None, scale=None, *,
                     block_windows=None, mxu_dtype=jnp.bfloat16,
                     vmem_limit_bytes=None):
    """fmap: (Bnw, WhWw, dim) f32; mask: (nw, WhWw, WhWw) or None."""
    Bnw, WhWw, dim = fmap.shape
    scale = dim ** (-0.5) if scale is None else scale

    has_mask = mask is not None
    nw = mask.shape[0] if has_mask else 1
    assert Bnw % nw == 0

    BW = block_windows if block_windows is not None else _pick_block_windows(
        Bnw, WhWw, nw)
    assert Bnw % BW == 0 and BW % nw == 0

    approx = jnp.dtype(mxu_dtype) != jnp.dtype(jnp.float32)

    # PyTorch Linear: y = x @ W^T + b.  Fuse QKV and fold the scale into q.
    wqkv = jnp.concatenate(
        [params["q_w"].T * scale, params["k_w"].T, params["v_w"].T],
        axis=1).astype(mxu_dtype)                                   # (dim, 3*dim)
    bqkv = jnp.concatenate(
        [params["q_b"] * scale, params["k_b"], params["v_b"]]
    ).reshape(1, 3 * dim).astype(jnp.float32)
    pw = params["proj_w"].T.astype(mxu_dtype)                       # (dim, dim)
    pb = params["proj_b"].reshape(1, dim).astype(jnp.float32)

    grid = (Bnw // BW,)
    full = lambda b: (0, 0)           # weights / biases: resident every step

    kernel = functools.partial(
        _window_attn_kernel, has_mask=has_mask, bw=BW, whww=WhWw, dim=dim,
        mxu_dtype=mxu_dtype, approx=approx)

    in_specs = []
    args = []
    if has_mask:
        # Pre-tile mask to one block's worth of windows; since BW % nw == 0 and
        # each block starts at a multiple of nw, the same tiled mask is exact
        # for every block.  Constant index_map -> stays resident in VMEM.
        mask_tiled = jnp.tile(mask.astype(jnp.float32), (BW // nw, 1, 1))
        in_specs.append(pl.BlockSpec((BW, WhWw, WhWw), lambda b: (0, 0, 0)))
        args.append(mask_tiled)

    in_specs += [
        pl.BlockSpec((BW, WhWw, dim), lambda b: (b, 0, 0)),          # fmap
        pl.BlockSpec((dim, 3 * dim), full),                          # wqkv
        pl.BlockSpec((1, 3 * dim), full),                            # bqkv
        pl.BlockSpec((dim, dim), full),                              # proj_w^T
        pl.BlockSpec((1, dim), full),                                # proj_b
    ]
    args += [fmap, wqkv, bqkv, pw, pb]

    return pl.pallas_call(
        kernel,
        out_shape=jax.ShapeDtypeStruct((Bnw, WhWw, dim), fmap.dtype),
        grid=grid,
        in_specs=in_specs,
        out_specs=pl.BlockSpec((BW, WhWw, dim), lambda b: (b, 0, 0)),
        compiler_params=pltpu.CompilerParams(
            dimension_semantics=("parallel",),
            vmem_limit_bytes=vmem_limit_bytes),
    )(*args)


def _reference(fmap, params, mask, scale):
    """Plain-JAX replica of the PyTorch forward for verification."""
    Bnw, WhWw, dim = fmap.shape
    lin = lambda x, w, b: x @ w.T + b
    q = lin(fmap, params["q_w"], params["q_b"]) * scale
    k = lin(fmap, params["k_w"], params["k_b"])
    v = lin(fmap, params["v_w"], params["v_b"])
    attn = q @ jnp.swapaxes(k, 1, 2)
    if mask is not None:
        nw = mask.shape[0]
        attn = attn.reshape(Bnw // nw, nw, WhWw, WhWw) + mask[None]
        attn = attn.reshape(Bnw, WhWw, WhWw)
    attn = jax.nn.softmax(attn, axis=-1)
    x = attn @ v
    return lin(x, params["proj_w"], params["proj_b"])


def _make_inputs(key, Bnw, WhWw, dim, nw):
    ks = jax.random.split(key, 10)
    params = {
        "q_w": jax.random.normal(ks[0], (dim, dim), jnp.float32) * 0.1,
        "q_b": jax.random.normal(ks[1], (dim,), jnp.float32) * 0.1,
        "k_w": jax.random.normal(ks[2], (dim, dim), jnp.float32) * 0.1,
        "k_b": jax.random.normal(ks[3], (dim,), jnp.float32) * 0.1,
        "v_w": jax.random.normal(ks[4], (dim, dim), jnp.float32) * 0.1,
        "v_b": jax.random.normal(ks[5], (dim,), jnp.float32) * 0.1,
        "proj_w": jax.random.normal(ks[6], (dim, dim), jnp.float32) * 0.1,
        "proj_b": jax.random.normal(ks[7], (dim,), jnp.float32) * 0.1,
    }
    fmap = jax.random.normal(ks[8], (Bnw, WhWw, dim), jnp.float32)
    mask = jax.random.normal(ks[9], (nw, WhWw, WhWw), jnp.float32)
    return params, fmap, mask


if __name__ == "__main__":
    dim, WhWw, nw = 32, 16, 2
    scale = dim ** (-0.5)
    key = jax.random.PRNGKey(0)

    # --- small setup: B=2, nw=2 -> Bnw=4 ---------------------------------
    params, fmap, mask = _make_inputs(key, 2 * nw, WhWw, dim, nw)
    ref = _reference(fmap, params, mask, scale)

    # 1) exact-math path (f32 MXU operands): tight tolerance.
    out_f32 = jax.block_until_ready(
        window_attention(fmap, params, mask=mask, scale=scale,
                         mxu_dtype=jnp.float32))
    np.testing.assert_allclose(np.asarray(out_f32), np.asarray(ref),
                               rtol=1e-5, atol=1e-5)

    # 2) performance path (bf16 MXU operands, f32 accumulation): loose tol.
    out_bf16 = jax.block_until_ready(
        window_attention(fmap, params, mask=mask, scale=scale))
    np.testing.assert_allclose(np.asarray(out_bf16), np.asarray(ref),
                               rtol=3e-2, atol=3e-2)

    # 3) maskless variant (no zero-mask DMA), exact-math path.
    out_nomask = jax.block_until_ready(
        window_attention(fmap, params, mask=None, scale=scale,
                         mxu_dtype=jnp.float32))
    ref_nomask = _reference(fmap, params, None, scale)
    np.testing.assert_allclose(np.asarray(out_nomask), np.asarray(ref_nomask),
                               rtol=1e-5, atol=1e-5)

    # --- slightly larger run: Bnw=64 -> BW=32, 2 grid steps ---------------
    params2, fmap2, mask2 = _make_inputs(jax.random.PRNGKey(1),
                                         32 * nw, WhWw, dim, nw)
    ref2 = _reference(fmap2, params2, mask2, scale)
    out2 = jax.block_until_ready(
        window_attention(fmap2, params2, mask=mask2, scale=scale))
    np.testing.assert_allclose(np.asarray(out2), np.asarray(ref2),
                               rtol=3e-2, atol=3e-2)

    print("KERNEL_OK")
</pallas_src>

<mosaic_0001>
module attributes {stable_mosaic.version = 11 : i64} {
  func.func @_window_attn_kernel(%arg0: i32, %arg1: memref<4x16x16xf32, #tpu.memory_space<vmem>>, %arg2: memref<4x16x32xf32, #tpu.memory_space<vmem>>, %arg3: memref<32x96xf32, #tpu.memory_space<vmem>>, %arg4: memref<1x96xf32, #tpu.memory_space<vmem>>, %arg5: memref<32x32xf32, #tpu.memory_space<vmem>>, %arg6: memref<1x32xf32, #tpu.memory_space<vmem>>, %arg7: memref<4x16x32xf32, #tpu.memory_space<vmem>>) attributes {dimension_semantics = [#tpu.dimension_semantics<parallel>], iteration_bounds = array<i64: 1>, scalar_prefetch = 0 : i64, scratch_operands = 0 : i64, tpu.core_type = #tpu.core_type<tc>, window_params = [{pipeline_mode = #tpu.pipeline_mode<synchronous>, transform_indices = @transform_0, window_bounds = array<i64: 4, 16, 16>}, {transform_indices = @transform_1, window_bounds = array<i64: 4, 16, 32>}, {pipeline_mode = #tpu.pipeline_mode<synchronous>, transform_indices = @transform_2, window_bounds = array<i64: 32, 96>}, {pipeline_mode = #tpu.pipeline_mode<synchronous>, transform_indices = @transform_3, window_bounds = array<i64: 1, 96>}, {pipeline_mode = #tpu.pipeline_mode<synchronous>, transform_indices = @transform_4, window_bounds = array<i64: 32, 32>}, {pipeline_mode = #tpu.pipeline_mode<synchronous>, transform_indices = @transform_5, window_bounds = array<i64: 1, 32>}, {transform_indices = @transform_6, window_bounds = array<i64: 4, 16, 32>}]} {
    %c0 = arith.constant 0 : index
    %c0_0 = arith.constant 0 : index
    %c0_1 = arith.constant 0 : index
    %0 = vector.load %arg2[%c0, %c0_0, %c0_1] : memref<4x16x32xf32, #tpu.memory_space<vmem>>, vector<4x16x32xf32>
    %1 = vector.shape_cast %0 : vector<4x16x32xf32> to vector<64x32xf32>
    %c0_2 = arith.constant 0 : index
    %c0_3 = arith.constant 0 : index
    %2 = vector.load %arg3[%c0_2, %c0_3] : memref<32x96xf32, #tpu.memory_space<vmem>>, vector<32x96xf32>
    %cst = arith.constant dense<0.000000e+00> : vector<64x96xf32>
    %3 = tpu.matmul %1, %2, %cst {dimension_numbers = #tpu.dot_dimension_numbers<[1], [0], [0], [1], [0, 0, 1, 1], [], []>} : vector<64x32xf32>, vector<32x96xf32>, vector<64x96xf32> -> vector<64x96xf32>
    %c0_4 = arith.constant 0 : index
    %c0_5 = arith.constant 0 : index
    %4 = vector.load %arg4[%c0_4, %c0_5] : memref<1x96xf32, #tpu.memory_space<vmem>>, vector<1x96xf32>
    %5 = vector.shape_cast %4 : vector<1x96xf32> to vector<96xf32>
    %6 = vector.shape_cast %5 : vector<96xf32> to vector<1x96xf32>
    %7 = vector.broadcast %6 : vector<1x96xf32> to vector<64x96xf32>
    %8 = arith.addf %3, %7 : vector<64x96xf32>
    %9 = vector.shape_cast %8 : vector<64x96xf32> to vector<4x16x96xf32>
    %10 = vector.extract_strided_slice %9 {offsets = [0, 0, 0], sizes = [4, 16, 32], strides = [1, 1, 1]} : vector<4x16x96xf32> to vector<4x16x32xf32>
    %11 = vector.extract_strided_slice %9 {offsets = [0, 0, 32], sizes = [4, 16, 32], strides = [1, 1, 1]} : vector<4x16x96xf32> to vector<4x16x32xf32>
    %12 = vector.extract_strided_slice %9 {offsets = [0, 0, 64], sizes = [4, 16, 32], strides = [1, 1, 1]} : vector<4x16x96xf32> to vector<4x16x32xf32>
    "tpu.trace_start"() <{level = 10 : i32, message = "bqd,bkd->bqk"}> : () -> ()
    %cst_6 = arith.constant dense<0.000000e+00> : vector<4x16x16xf32>
    %13 = tpu.matmul %10, %11, %cst_6 {dimension_numbers = #tpu.dot_dimension_numbers<[2], [2], [1], [1], [0, 0, 0, 1, 1, 1], [0], [0]>} : vector<4x16x32xf32>, vector<4x16x32xf32>, vector<4x16x16xf32> -> vector<4x16x16xf32>
    "tpu.trace_stop"() : () -> ()
    %c0_7 = arith.constant 0 : index
    %c0_8 = arith.constant 0 : index
    %c0_9 = arith.constant 0 : index
    %14 = vector.load %arg1[%c0_7, %c0_8, %c0_9] : memref<4x16x16xf32, #tpu.memory_space<vmem>>, vector<4x16x16xf32>
    %15 = arith.addf %13, %14 : vector<4x16x16xf32>
    %cst_10 = arith.constant dense<0xFF800000> : vector<4x16xf32>
    %16 = vector.multi_reduction <maximumf>, %15, %cst_10 [2] : vector<4x16x16xf32> to vector<4x16xf32>
    %17 = vector.shape_cast %16 : vector<4x16xf32> to vector<4x16x1xf32>
    %18 = vector.broadcast %17 : vector<4x16x1xf32> to vector<4x16x16xf32>
    %19 = arith.subf %15, %18 : vector<4x16x16xf32>
    %20 = math.exp %19 : vector<4x16x16xf32>
    %cst_11 = arith.constant dense<0.000000e+00> : vector<4x16xf32>
    %21 = vector.multi_reduction <add>, %20, %cst_11 [2] : vector<4x16x16xf32> to vector<4x16xf32>
    %22 = vector.shape_cast %21 : vector<4x16xf32> to vector<4x16x1xf32>
    %23 = vector.broadcast %22 : vector<4x16x1xf32> to vector<4x16x16xf32>
    %24 = arith.divf %20, %23 : vector<4x16x16xf32>
    "tpu.trace_start"() <{level = 10 : i32, message = "bqk,bkd->bqd"}> : () -> ()
    %cst_12 = arith.constant dense<0.000000e+00> : vector<4x16x32xf32>
    %25 = tpu.matmul %24, %12, %cst_12 {dimension_numbers = #tpu.dot_dimension_numbers<[2], [1], [1], [2], [0, 0, 0, 1, 1, 2], [0], [0]>} : vector<4x16x16xf32>, vector<4x16x32xf32>, vector<4x16x32xf32> -> vector<4x16x32xf32>
    "tpu.trace_stop"() : () -> ()
    %26 = vector.shape_cast %25 : vector<4x16x32xf32> to vector<64x32xf32>
    %c0_13 = arith.constant 0 : index
    %c0_14 = arith.constant 0 : index
    %27 = vector.load %arg5[%c0_13, %c0_14] : memref<32x32xf32, #tpu.memory_space<vmem>>, vector<32x32xf32>
    %cst_15 = arith.constant dense<0.000000e+00> : vector<64x32xf32>
    %28 = tpu.matmul %26, %27, %cst_15 {dimension_numbers = #tpu.dot_dimension_numbers<[1], [0], [0], [1], [0, 0, 1, 1], [], []>} : vector<64x32xf32>, vector<32x32xf32>, vector<64x32xf32> -> vector<64x32xf32>
    %c0_16 = arith.constant 0 : index
    %c0_17 = arith.constant 0 : index
    %29 = vector.load %arg6[%c0_16, %c0_17] : memref<1x32xf32, #tpu.memory_space<vmem>>, vector<1x32xf32>
    %30 = vector.shape_cast %29 : vector<1x32xf32> to vector<32xf32>
    %31 = vector.shape_cast %30 : vector<32xf32> to vector<1x32xf32>
    %32 = vector.broadcast %31 : vector<1x32xf32> to vector<64x32xf32>
    %33 = arith.addf %28, %32 : vector<64x32xf32>
    %34 = vector.shape_cast %33 : vector<64x32xf32> to vector<4x16x32xf32>
    %c0_18 = arith.constant 0 : index
    %c0_19 = arith.constant 0 : index
    %c0_20 = arith.constant 0 : index
    %35 = vector.load %arg7[%c0_18, %c0_19, %c0_20] : memref<4x16x32xf32, #tpu.memory_space<vmem>>, vector<4x16x32xf32>
    tpu.vector_store %arg7[%c0_18, %c0_19, %c0_20], %34 {strides = array<i32>} : memref<4x16x32xf32, #tpu.memory_space<vmem>>, vector<4x16x32xf32>,
    return
  }
  func.func @transform_0(%arg0: i32) -> (i32, i32, i32) {
    %c0_i32 = arith.constant 0 : i32
    %c0_i32_0 = arith.constant 0 : i32
    %c0_i32_1 = arith.constant 0 : i32
    %c0_i32_2 = arith.constant 0 : i32
    return %c0_i32, %c0_i32_0, %c0_i32_1 : i32, i32, i32
  }
  func.func @transform_1(%arg0: i32) -> (i32, i32, i32) {
    %c0_i32 = arith.constant 0 : i32
    %c0_i32_0 = arith.constant 0 : i32
    %c0_i32_1 = arith.constant 0 : i32
    return %arg0, %c0_i32, %c0_i32_0 : i32, i32, i32
  }
  func.func @transform_2(%arg0: i32) -> (i32, i32) {
    %c0_i32 = arith.constant 0 : i32
    %c0_i32_0 = arith.constant 0 : i32
    %c0_i32_1 = arith.constant 0 : i32
    return %c0_i32, %c0_i32_0 : i32, i32
  }
  func.func @transform_3(%arg0: i32) -> (i32, i32) {
    %c0_i32 = arith.constant 0 : i32
    %c0_i32_0 = arith.constant 0 : i32
    %c0_i32_1 = arith.constant 0 : i32
    return %c0_i32, %c0_i32_0 : i32, i32
  }
  func.func @transform_4(%arg0: i32) -> (i32, i32) {
    %c0_i32 = arith.constant 0 : i32
    %c0_i32_0 = arith.constant 0 : i32
    %c0_i32_1 = arith.constant 0 : i32
    return %c0_i32, %c0_i32_0 : i32, i32
  }
  func.func @transform_5(%arg0: i32) -> (i32, i32) {
    %c0_i32 = arith.constant 0 : i32
    %c0_i32_0 = arith.constant 0 : i32
    %c0_i32_1 = arith.constant 0 : i32
    return %c0_i32, %c0_i32_0 : i32, i32
  }
  func.func @transform_6(%arg0: i32) -> (i32, i32, i32) {
    %c0_i32 = arith.constant 0 : i32
    %c0_i32_0 = arith.constant 0 : i32
    %c0_i32_1 = arith.constant 0 : i32
    return %arg0, %c0_i32, %c0_i32_0 : i32, i32, i32
  }
}

</mosaic_0001>

<bundles_post_ra>
// kernel: tpu_custom_call.1
= control target key start
LH: loop header
LB: loop body
LE: loop exit
PB: predicated region body
PF: predicated region fallthrough
CT: control target
= control target key end

     0   :  { %11 = vsyncpa [#allocation3], 0  ;;  %s1227_s0 = inlined_call_operand.hbm [shape: f32[4,16,16], index: 0, kind: input, shape index: {}]   ;;  %s1228_s1 = inlined_call_operand.hbm [shape: f32[4,16,32], index: 1, kind: input, shape index: {}]   ;;  %s1229_s2 = inlined_call_operand.hbm [shape: f32[32,96], index: 2, kind: input, shape index: {}]   ;;  %s1230_s3 = inlined_call_operand.vmem [shape: f32[1,96], index: 3, kind: input, shape index: {}]   ;;  %s1231_s4 = inlined_call_operand.hbm [shape: f32[32,32], index: 4, kind: input, shape index: {}]   ;;  %s1232_s5 = inlined_call_operand.vmem [shape: f32[1,32], index: 5, kind: input, shape index: {}]   ;;  %s1233_s6 = inlined_call_operand.hbm [shape: f32[4,16,32], index: 6, kind: output, shape index: {}]  }
   0x1   :  { %12 = vsyncpa [#allocation6], 0 }
   0x2   :  { %13 = vsyncpa [#allocation9], 0 }
   0x3   :  { %14 = vsyncpa [#allocation4], 0  ;;  %s32_s23 = sshll.u32 %s1228_s1, 4  ;;  %s991_s24 = smov [#allocation5]   ;;  %s33_s23 = int_to_ptr.hbm [resolvable:$true] %s32_s23 }
   0x4   :  { %s34_s25 = sshll.u32 %s991_s24, 4  ;;  %s19_s28 = sshll.u32 %s1227_s0, 4  ;;  %s35_s25 = int_to_ptr.vmem [resolvable:$true] %s34_s25  ;;  %s20_s28 = int_to_ptr.hbm [resolvable:$true] %s19_s28 }
   0x5   :  { %s992_s29 = smov 128   ;;  %s993_s30 = smov 8  }
   0x6   :  { %40 = dma.hbm_to_vmem [thread:$0]  %s33_s23, 1024, %s35_s25, [#allocation6], %s992_s29, %s992_s29, %s993_s30  }
   0x7   :  { %s994_s7 = smov [#allocation2]   ;;  %s45_s1 = sshll.u32 %s1229_s2, 4  ;;  %s46_s1 = int_to_ptr.hbm [resolvable:$true] %s45_s1 }
   0x8   :  { %s21_s8 = sshll.u32 %s994_s7, 4  ;;  %s60_s12 = sshll.u32 %s1231_s4, 4  ;;  %s22_s8 = int_to_ptr.vmem [resolvable:$true] %s21_s8  ;;  %s61_s12 = int_to_ptr.hbm [resolvable:$true] %s60_s12 }
   0x9   :  { %27 = dma.hbm_to_vmem [thread:$0]  %s20_s28, 1024, %s22_s8, [#allocation3], %s992_s29, %s992_s29, %s993_s30  }
   0xa   :  { %s995_s13 = smov [#allocation7]   ;;  %s996_s15 = smov [#allocation8]  }
   0xb   :  { %s47_s14 = sshll.u32 %s995_s13, 4  ;;  %s62_s2 = sshll.u32 %s996_s15, 4  ;;  %s48_s14 = int_to_ptr.vmem [resolvable:$true] %s47_s14  ;;  %s63_s2 = int_to_ptr.vmem [resolvable:$true] %s62_s2 }
   0xc   :  { %53 = dma.hbm_to_vmem [thread:$0]  %s46_s1, 512, %s48_s14, [#allocation6], %s992_s29, %s992_s29, %s993_s30  }
   0xd   :  { %68 = dma.hbm_to_vmem [thread:$0]  %s61_s12, 512, %s63_s2, [#allocation9], %s992_s29, %s992_s29, %s993_s30  }
   0xe   :  { %983 = dma.done.wait [#allocation3], 1024  }
   0xf   :  { %984 = vsyncadd [#allocation3], 4294966272 }
  0x10   :  { %985 = dma.done.wait [#allocation6], 1536  }
  0x11   :  { %986 = vsyncadd [#allocation6], 4294965760 }
  0x12   :  { %987 = dma.done.wait [#allocation9], 512  }
  0x13   :  { %988 = vsyncadd [#allocation9], 4294966784  ;;  %v98_v0 = vld [vmem:[#allocation7 + $0x18] sm:$0xff]  ;;  %v97_v1 = vld [vmem:[#allocation7 + $0x10] sm:$0xff]  ;;  %vm103_vm0 = vcmask 261120   ;;  %s997_s17 = smov 96  }
  0x14   :  { %140 = vmatpush.msra.mxu0 %v98_v0  ;;  %v96_v2 = vld [vmem:[#allocation7 + $0x8] sm:$0xff]  ;;  %v95_v3 = vld [vmem:[#allocation7] sm:$0xff]  ;;  %v89_v6 = vld [vmem:[#allocation5 + $0x10] sm:$0xff]  ;;  %vm325_vm1 = vcmask 130048   ;;  %s745_s23 = sshll.u32 %s1233_s6, 4  ;;  %s746_s23 = int_to_ptr.hbm [resolvable:$true] %s745_s23 }
  0x15   :  { %v87_v4 = vld [vmem:[#allocation5] sm:$0xff]  ;;  %v88_v5 = vld [vmem:[#allocation5 + $0x8] sm:$0xff]  ;;  %v90_v7 = vld [vmem:[#allocation5 + $0x18] sm:$0xff] }
  0x16   :  { %141 = vmatpush.msra.mxu0 %v97_v1  ;;  %v91_v8 = vld [vmem:[#allocation5 + $0x20] sm:$0xff]  ;;  %v92_v9 = vld [vmem:[#allocation5 + $0x28] sm:$0xff]  ;;  %v93_v10 = vld [vmem:[#allocation5 + $0x30] sm:$0xff] }
  0x17   :  { %v94_v11 = vld [vmem:[#allocation5 + $0x38] sm:$0xff]  ;;  %v829_v13 = vld [vmem:[%s1230_s3] ss:$0 sm:$0xff]  ;;  %v170_v41 = vld [vmem:[#allocation2 + $0x8] sm:$0xff]  ;;  %s998_s3 = smov 64  }
  0x18   :  { %142 = vmatpush.msra.mxu0 %v96_v2  ;;  %v169_v37 = vld [vmem:[#allocation2] sm:$0xff]  ;;  %v171_v46 = vld [vmem:[#allocation2 + $0x10] sm:$0xff]  ;;  %v174_v48 = vld [vmem:[#allocation2 + $0x28] sm:$0xff] }
  0x19   :  { %v172_v54 = vld [vmem:[#allocation2 + $0x18] sm:$0xff]  ;;  %v173_v58 = vld [vmem:[#allocation2 + $0x20] sm:$0xff]  ;;  %v175_v61 = vld [vmem:[#allocation2 + $0x30] sm:$0xff] }
  0x1a   :  { %143 = vmatpush.msra.mxu0 %v95_v3  ;;  %v176_v1 = vld [vmem:[#allocation2 + $0x38] sm:$0xff] }
  0x1b   :  { %760 = vmatmul.msk.f32.vlgmr.msra.gmra.mxu0 %vm103_vm0, %v87_v4 }
  0x23   :  { %761 = vmatmul.msk.f32.gmra.mxu0 %vm103_vm0, %v88_v5 }
  0x2b   :  { %762 = vmatmul.msk.f32.gmra.mxu0 %vm103_vm0, %v89_v6 }
  0x33   :  { %763 = vmatmul.msk.f32.gmra.mxu0 %vm103_vm0, %v90_v7 }
  0x3b   :  { %764 = vmatmul.msk.f32.gmra.mxu0 %vm103_vm0, %v91_v8 }
  0x43   :  { %765 = vmatmul.msk.f32.gmra.mxu0 %vm103_vm0, %v92_v9 }
  0x4b   :  { %766 = vmatmul.msk.f32.gmra.mxu0 %vm103_vm0, %v93_v10 }
  0x53   :  { %767 = vmatmul.msk.f32.gmra.mxu0 %vm103_vm0, %v94_v11 }
  0x98   :  { %v145_v12 = vpop.f32.mrf.mxu0 }
  0x99   :  { %v1073_v17 = vadd.f32 %v829_v13, %v145_v12 }
  0xa0   :  { %v148_v14 = vpop.f32.mrf.mxu0 }
  0xa1   :  { %v1070_v15 = vadd.f32 %v829_v13, %v148_v14 }
  0xa3   :  { %181 = vrot.lane.b32.xlu0 %v1070_v15, %s997_s17  ;;  %v809_v5 = vpack.i.bf16 %v1073_v17, %v1070_v15 }
  0xa8   :  { %v151_v16 = vpop.f32.mrf.mxu0 }
  0xa9   :  { %v1079_v21 = vadd.f32 %v829_v13, %v151_v16 }
  0xab   :  { %179 = vrot.lane.b32.xlu0 %v1073_v17, %s997_s17 }
  0xb0   :  { %v154_v18 = vpop.f32.mrf.mxu0 }
  0xb1   :  { %v1076_v19 = vadd.f32 %v829_v13, %v154_v18 }
  0xb3   :  { %218 = vrot.lane.b32.xlu1 %v1076_v19, %s997_s17 }
  0xb8   :  { %v157_v20 = vpop.f32.mrf.mxu0 }
  0xb9   :  { %v1085_v24 = vadd.f32 %v829_v13, %v157_v20 }
  0xbb   :  { %216 = vrot.lane.b32.xlu1 %v1079_v21, %s997_s17 }
  0xc0   :  { %v160_v22 = vpop.f32.mrf.mxu0 }
  0xc1   :  { %v1082_v23 = vadd.f32 %v829_v13, %v160_v22 }
  0xc3   :  { %255 = vrot.lane.b32.xlu2 %v1082_v23, %s997_s17 }
  0xc8   :  { %v163_v25 = vpop.f32.mrf.mxu0 }
  0xc9   :  { %v1087_v26 = vadd.f32 %v829_v13, %v163_v25 }
  0xcb   :  { %253 = vrot.lane.b32.xlu2 %v1085_v24, %s997_s17  ;;  %290 = vrot.lane.b32.xlu1 %v1087_v26, %s997_s17 }
  0xd0   :  { %v166_v27 = vpop.f32.mrf.mxu0 }
  0xd1   :  { %v1091_v28 = vadd.f32 %v829_v13, %v166_v27 }
  0xd3   :  { %292 = vrot.lane.b32.xlu0 %v1091_v28, %s997_s17 }
 0x115   :  { %v182_v29 = vpop.permute.xlu0 %181 }
 0x116   :  { %768 = vmatpush.xpose.msk.msra.mxu1 %vm103_vm0, %v182_v29 }
 0x11d   :  { %v180_v30 = vpop.permute.xlu0 %179  ;;  %v256_v31 = vpop.permute.xlu2 %255 }
 0x11e   :  { %769 = vmatpush.xpose.msk.msra.mxu1 %vm103_vm0, %v180_v30 }
 0x121   :  { %770 = vmatmul.msk.f32.vlgmr.msra.gmra.mxu1 %vm103_vm0, %v1073_v17 }
 0x122   :  { %776 = vmatpush.xpose.msk.msrb.mxu1 %vm103_vm0, %v256_v31 }
 0x125   :  { %v219_v32 = vpop.permute.xlu1 %218  ;;  %v254_v33 = vpop.permute.xlu2 %253 }
 0x126   :  { %772 = vmatpush.xpose.msk.msra.mxu2 %vm103_vm0, %v219_v32  ;;  %777 = vmatpush.xpose.msk.msrb.mxu1 %vm103_vm0, %v254_v33 }
 0x129   :  { %771 = vmatmul.msk.f32.gmra.mxu1 %vm103_vm0, %v1070_v15 }
 0x12d   :  { %v217_v34 = vpop.permute.xlu1 %216 }
 0x12e   :  { %773 = vmatpush.xpose.msk.msra.mxu2 %vm103_vm0, %v217_v34 }
 0x131   :  { %774 = vmatmul.msk.f32.vlgmr.msra.gmra.mxu2 %vm103_vm0, %v1079_v21  ;;  %778 = vmatmul.msk.f32.vlgmr.msrb.gmra.mxu1 %vm103_vm0, %v1085_v24 }
 0x139   :  { %775 = vmatmul.msk.f32.gmra.mxu2 %vm103_vm0, %v1076_v19  ;;  %779 = vmatmul.msk.f32.gmra.mxu1 %vm103_vm0, %v1082_v23 }
 0x13d   :  { %v291_v36 = vpop.permute.xlu1 %290 }
 0x145   :  { %v293_v35 = vpop.permute.xlu0 %292 }
 0x146   :  { %780 = vmatpush.xpose.msk.msra.mxu1 %vm103_vm0, %v293_v35 }
 0x14a   :  { %781 = vmatpush.xpose.msk.msra.mxu1 %vm103_vm0, %v291_v36 }
 0x14d   :  { %782 = vmatmul.msk.f32.vlgmr.msra.gmra.mxu1 %vm103_vm0, %v1087_v26 }
 0x155   :  { %783 = vmatmul.msk.f32.gmra.mxu1 %vm103_vm0, %v1091_v28 }
 0x19e   :  { %v208_v38 = vpop.f32.mrf.mxu1 }
 0x19f   :  { %v209_v39 = vadd.f32 %v208_v38, %v169_v37 }
 0x1a1   :  { %v326_v40 = vsel %vm325_vm1, %v209_v39, -inf }
 0x1a2   :  { %327 = vmax.xlane.f32.xlu2 %v326_v40 }
 0x1a6   :  { %v211_v42 = vpop.f32.mrf.mxu1 }
 0x1a7   :  { %v212_v43 = vadd.f32 %v211_v42, %v170_v41 }
 0x1a9   :  { %v329_v44 = vsel %vm325_vm1, %v212_v43, -inf }
 0x1aa   :  { %330 = vmax.xlane.f32.xlu0 %v329_v44 }
 0x1ae   :  { %v282_v45 = vpop.f32.mrf.mxu1 }
 0x1af   :  { %v283_v59 = vadd.f32 %v282_v45, %v173_v58 }
 0x1b1   :  { %v338_v60 = vsel %vm325_vm1, %v283_v59, -inf }
 0x1b4   :  { %v245_v47 = vpop.f32.mrf.mxu2 }
 0x1b5   :  { %v246_v49 = vadd.f32 %v245_v47, %v171_v46  ;;  %v814_v46 = vpack.i.bf16 %v1079_v21, %v1076_v19  ;;  %v824_v21 = vpack.i.bf16 %v1087_v26, %v1091_v28 }
 0x1b6   :  { %v285_v50 = vpop.f32.mrf.mxu1 }
 0x1b7   :  { %v286_v51 = vadd.f32 %v285_v50, %v174_v48  ;;  %v332_v52 = vsel %vm325_vm1, %v246_v49, -inf }
 0x1b8   :  { %333 = vmax.xlane.f32.xlu1 %v332_v52 }
 0x1b9   :  { %v341_v53 = vsel %vm325_vm1, %v286_v51, -inf }
 0x1ba   :  { %342 = vmax.xlane.f32.xlu0 %v341_v53  ;;  %v819_v53 = vpack.i.bf16 %v1085_v24, %v1082_v23 }
 0x1bc   :  { %v248_v55 = vpop.f32.mrf.mxu2 }
 0x1bd   :  { %v249_v56 = vadd.f32 %v248_v55, %v172_v54 }
 0x1bf   :  { %v335_v57 = vsel %vm325_vm1, %v249_v56, -inf }
 0x1c0   :  { %336 = vmax.xlane.f32.xlu2 %v335_v57 }
 0x1c8   :  { %339 = vmax.xlane.f32.xlu2 %v338_v60 }
 0x1ca   :  { %v319_v62 = vpop.f32.mrf.mxu1 }
 0x1cb   :  { %v320_v63 = vadd.f32 %v319_v62, %v175_v61 }
 0x1cd   :  { %v344_v0 = vsel %vm325_vm1, %v320_v63, -inf }
 0x1ce   :  { %345 = vmax.xlane.f32.xlu1 %v344_v0 }
 0x1d2   :  { %v322_v2 = vpop.f32.mrf.mxu1 }
 0x1d3   :  { %v1125_v3 = vadd.f32 %v322_v2, %v176_v1 }
 0x1d5   :  { %v347_v4 = vsel %vm325_vm1, %v1125_v3, -inf }
 0x1d6   :  { %348 = vmax.xlane.f32.xlu0 %v347_v4 }
 0x1ea   :  { %810 = vrot.lane.b32.xlu0 %v809_v5, %s998_s3 }
 0x215   :  { %v328_v6 = vpop.xlane.xlu2 %327 }
 0x216   :  { %v350_v7 = vsub.f32 %v209_v39, %v328_v6 }
 0x218   :  { %v358_v8 = vmul.f32 1.442695, %v350_v7 }
 0x21a   :  { %831 = vpow2.f32 %v358_v8 }
 0x21d   :  { %v331_v9 = vpop.xlane.xlu0 %330 }
 0x21e   :  { %v351_v10 = vsub.f32 %v212_v43, %v331_v9 }
 0x220   :  { %v1132_v11 = vpop.eup %831  ;;  %v360_v12 = vmul.f32 1.442695, %v351_v10 }
 0x221   :  { %v374_v13 = vsel %vm325_vm1, %v1132_v11, 0.0 }
 0x222   :  { %833 = vpow2.f32 %v360_v12  ;;  %375 = vadd.xlane.f32.xlu2 %v374_v13 }
 0x228   :  { %v1136_v14 = vpop.eup %833 }
 0x229   :  { %v377_v15 = vsel %vm325_vm1, %v1136_v14, 0.0 }
 0x22a   :  { %378 = vadd.xlane.f32.xlu1 %v377_v15 }
 0x22b   :  { %v334_v16 = vpop.xlane.xlu1 %333 }
 0x22c   :  { %v352_v17 = vsub.f32 %v246_v49, %v334_v16 }
 0x22d   :  { %v343_v30 = vpop.xlane.xlu0 %342 }
 0x22e   :  { %v362_v18 = vmul.f32 1.442695, %v352_v17  ;;  %v355_v33 = vsub.f32 %v286_v51, %v343_v30 }
 0x230   :  { %835 = vpow2.f32 %v362_v18  ;;  %v368_v37 = vmul.f32 1.442695, %v355_v33 }
 0x233   :  { %v337_v20 = vpop.xlane.xlu2 %336 }
 0x234   :  { %v353_v22 = vsub.f32 %v249_v56, %v337_v20 }
 0x236   :  { %v1140_v25 = vpop.eup %835  ;;  %v364_v27 = vmul.f32 1.442695, %v353_v22 }
 0x237   :  { %v380_v29 = vsel %vm325_vm1, %v1140_v25, 0.0 }
 0x238   :  { %837 = vpow2.f32 %v364_v27  ;;  %381 = vadd.xlane.f32.xlu2 %v380_v29 }
 0x23b   :  { %v340_v31 = vpop.xlane.xlu2 %339 }
 0x23c   :  { %v354_v32 = vsub.f32 %v283_v59, %v340_v31 }
 0x23e   :  { %v1144_v34 = vpop.eup %837  ;;  %v366_v35 = vmul.f32 1.442695, %v354_v32 }
 0x23f   :  { %v383_v36 = vsel %vm325_vm1, %v1144_v34, 0.0 }
 0x240   :  { %839 = vpow2.f32 %v366_v35  ;;  %384 = vadd.xlane.f32.xlu1 %v383_v36 }
 0x241   :  { %v346_v38 = vpop.xlane.xlu1 %345  ;;  %841 = vpow2.f32 %v368_v37 }
 0x242   :  { %v356_v39 = vsub.f32 %v320_v63, %v346_v38 }
 0x244   :  { %v370_v40 = vmul.f32 1.442695, %v356_v39 }
 0x246   :  { %v1148_v41 = vpop.eup %839  ;;  %843 = vpow2.f32 %v370_v40 }
 0x247   :  { %v386_v42 = vsel %vm325_vm1, %v1148_v41, 0.0  ;;  %v1152_v43 = vpop.eup %841 }
 0x248   :  { %387 = vadd.xlane.f32.xlu1 %v386_v42  ;;  %v389_v47 = vsel %vm325_vm1, %v1152_v43, 0.0 }
 0x249   :  { %v349_v48 = vpop.xlane.xlu0 %348 }
 0x24a   :  { %v357_v52 = vsub.f32 %v1125_v3, %v349_v48 }
 0x24c   :  { %v1154_v44 = vpop.eup %843  ;;  %v372_v19 = vmul.f32 1.442695, %v357_v52 }
 0x24d   :  { %v392_v45 = vsel %vm325_vm1, %v1154_v44, 0.0 }
 0x24e   :  { %393 = vadd.xlane.f32.xlu0 %v392_v45  ;;  %845 = vpow2.f32 %v372_v19 }
 0x250   :  { %815 = vrot.lane.b32.xlu2 %v814_v46, %s998_s3  ;;  %390 = vadd.xlane.f32.xlu1 %v389_v47 }
 0x254   :  { %v1170_v54 = vpop.eup %845 }
 0x255   :  { %v395_v55 = vsel %vm325_vm1, %v1170_v54, 0.0 }
 0x25c   :  { %v811_v49 = vpop.permute.xlu0 %810 }
 0x25d   :  { %v812_v50 = vunpack.i.l.bf16 %v811_v49  ;;  %v813_v51 = vunpack.i.h.bf16 %v811_v49 }
 0x25f   :  { %544 = vmatpush.msrb.mxu2 %v812_v50 }
 0x261   :  { %545 = vmatpush.msrb.mxu2 %v813_v51 }
 0x269   :  { %820 = vrot.lane.b32.xlu1 %v819_v53, %s998_s3 }
 0x271   :  { %825 = vrot.lane.b32.xlu1 %v824_v21, %s998_s3 }
 0x279   :  { %396 = vadd.xlane.f32.xlu2 %v395_v55 }
 0x295   :  { %v376_v56 = vpop.xlane.xlu2 %375 }
 0x296   :  { %847 = vrcp.f32 %v376_v56  ;;  %v409_v59 = vand.u32 2147483648, %v376_v56  ;;  %v407_v61 = vand.u32 2147483647, %v376_v56  ;;  %vm403_vm3 = vweird.f32 %v376_v56 }
 0x298   :  { %v410_v62 = vor.u32 1.1754944e-38, %v409_v59  ;;  %vm408_vm5 = vcmp.eq.f32.partialorder %v407_v61, 8.507059e+37 }
 0x29c   :  { %v848_v57 = vpop.eup %847 }
 0x29d   :  { %v399_v58 = vmul.f32 %v848_v57, %v376_v56  ;;  %v379_v23 = vpop.xlane.xlu1 %378  ;;  %vm404_vm2 = vweird.f32 %v848_v57 }
 0x29e   :  { %849 = vrcp.f32 %v379_v23  ;;  %vm405_vm4 = vmor %vm403_vm3, %vm404_vm2  ;;  %v424_v4 = vand.u32 2147483648, %v379_v23  ;;  %v422_v6 = vand.u32 2147483647, %v379_v23  ;;  %vm418_vm7 = vweird.f32 %v379_v23 }
 0x29f   :  { %v400_v24 = vsub.f32 1.0, %v399_v58 }
 0x2a0   :  { %v425_v9 = vor.u32 1.1754944e-38, %v424_v4  ;;  %vm423_vm9 = vcmp.eq.f32.partialorder %v422_v6, 8.507059e+37 }
 0x2a1   :  { %v401_v60 = vmul.f32 %v848_v57, %v400_v24 }
 0x2a3   :  { %v402_v26 = vadd.f32 %v848_v57, %v401_v60 }
 0x2a4   :  { %v850_v28 = vpop.eup %849 }
 0x2a5   :  { %v414_v63 = vmul.f32 %v850_v28, %v379_v23  ;;  %v406_v0 = vsel %vm405_vm4, %v848_v57, %v402_v26  ;;  %vm419_vm6 = vweird.f32 %v850_v28 }
 0x2a6   :  { %v411_v1 = vsel %vm408_vm5, %v410_v62, %v406_v0  ;;  %vm420_vm8 = vmor %vm418_vm7, %vm419_vm6 }
 0x2a7   :  { %v415_v2 = vsub.f32 1.0, %v414_v63  ;;  %v412_v3 = vmul.f32 %v1132_v11, %v411_v1 }
 0x2a9   :  { %v416_v5 = vmul.f32 %v850_v28, %v415_v2  ;;  %784 = vmatmul.msk.f32.vlgmr.msrb.gmra.mxu2 %vm325_vm1, %v412_v3 }
 0x2ab   :  { %v382_v7 = vpop.xlane.xlu2 %381  ;;  %v417_v8 = vadd.f32 %v850_v28, %v416_v5 }
 0x2ac   :  { %851 = vrcp.f32 %v382_v7  ;;  %v439_v22 = vand.u32 2147483648, %v382_v7  ;;  %v437_v30 = vand.u32 2147483647, %v382_v7  ;;  %vm433_vm11 = vweird.f32 %v382_v7 }
 0x2ad   :  { %v421_v10 = vsel %vm420_vm8, %v850_v28, %v417_v8 }
 0x2ae   :  { %v426_v12 = vsel %vm423_vm9, %v425_v9, %v421_v10  ;;  %vm438_vm13 = vcmp.eq.f32.partialorder %v437_v30, 8.507059e+37 }
 0x2af   :  { %v427_v13 = vmul.f32 %v1136_v14, %v426_v12  ;;  %v440_v14 = vor.u32 1.1754944e-38, %v439_v22 }
 0x2b1   :  { %785 = vmatmul.msk.f32.gmra.mxu2 %vm325_vm1, %v427_v13  ;;  %v661_v13 = vld [vmem:[#allocation8 + $0x18] sm:$0xff] }
 0x2b2   :  { %v852_v11 = vpop.eup %851  ;;  %702 = vmatpush.msra.mxu3 %v661_v13 }
 0x2b3   :  { %v429_v15 = vmul.f32 %v852_v11, %v382_v7  ;;  %v816_v16 = vpop.permute.xlu2 %815  ;;  %v385_v17 = vpop.xlane.xlu1 %384  ;;  %vm434_vm10 = vweird.f32 %v852_v11 }
 0x2b4   :  { %v817_v18 = vunpack.i.l.bf16 %v816_v16  ;;  %853 = vrcp.f32 %v385_v17  ;;  %v818_v27 = vunpack.i.h.bf16 %v816_v16  ;;  %vm435_vm12 = vmor %vm433_vm11, %vm434_vm10  ;;  %v454_v42 = vand.u32 2147483648, %v385_v17 }
 0x2b5   :  { %v430_v20 = vsub.f32 1.0, %v429_v15  ;;  %v452_v45 = vand.u32 2147483647, %v385_v17  ;;  %vm448_vm15 = vweird.f32 %v385_v17 }
 0x2b6   :  { %579 = vmatpush.msra.mxu2 %v817_v18  ;;  %v455_v47 = vor.u32 1.1754944e-38, %v454_v42 }
 0x2b7   :  { %v431_v29 = vmul.f32 %v852_v11, %v430_v20  ;;  %vm453_vm3 = vcmp.eq.f32.partialorder %v452_v45, 8.507059e+37 }
 0x2b8   :  { %580 = vmatpush.msra.mxu2 %v818_v27 }
 0x2b9   :  { %v432_v31 = vadd.f32 %v852_v11, %v431_v29 }
 0x2ba   :  { %v854_v32 = vpop.eup %853 }
 0x2bb   :  { %v436_v33 = vsel %vm435_vm12, %v852_v11, %v432_v31  ;;  %v444_v35 = vmul.f32 %v854_v32, %v385_v17  ;;  %v388_v36 = vpop.xlane.xlu1 %387  ;;  %vm449_vm14 = vweird.f32 %v854_v32  ;;  %v660_v11 = vld [vmem:[#allocation8 + $0x10] sm:$0xff] }
 0x2bc   :  { %v441_v37 = vsel %vm438_vm13, %v440_v14, %v436_v33  ;;  %855 = vrcp.f32 %v388_v36  ;;  %vm450_vm2 = vmor %vm448_vm15, %vm449_vm14  ;;  %v469_v60 = vand.u32 2147483648, %v388_v36  ;;  %vm463_vm5 = vweird.f32 %v388_v36  ;;  %703 = vmatpush.msra.mxu3 %v660_v11 }
 0x2bd   :  { %v445_v38 = vsub.f32 1.0, %v444_v35  ;;  %v442_v39 = vmul.f32 %v1140_v25, %v441_v37  ;;  %v467_v61 = vand.u32 2147483647, %v388_v36 }
 0x2be   :  { %v470_v62 = vor.u32 1.1754944e-38, %v469_v60 }
 0x2bf   :  { %v446_v40 = vmul.f32 %v854_v32, %v445_v38  ;;  %786 = vmatmul.msk.f32.vlgmr.msra.gmra.mxu2 %vm325_vm1, %v442_v39  ;;  %vm468_vm7 = vcmp.eq.f32.partialorder %v467_v61, 8.507059e+37 }
 0x2c1   :  { %v447_v46 = vadd.f32 %v854_v32, %v446_v40  ;;  %v394_v49 = vpop.xlane.xlu0 %393 }
 0x2c2   :  { %v856_v52 = vpop.eup %855  ;;  %857 = vrcp.f32 %v394_v49  ;;  %vm493_vm10 = vweird.f32 %v394_v49  ;;  %v499_v4 = vand.u32 2147483648, %v394_v49  ;;  %v497_v8 = vand.u32 2147483647, %v394_v49 }
 0x2c3   :  { %v451_v48 = vsel %vm450_vm2, %v854_v32, %v447_v46  ;;  %v391_v50 = vpop.xlane.xlu1 %390  ;;  %v459_v25 = vmul.f32 %v856_v52, %v388_v36  ;;  %vm464_vm4 = vweird.f32 %v856_v52  ;;  %v658_v46 = vld [vmem:[#allocation8] sm:$0xff] }
 0x2c4   :  { %v456_v51 = vsel %vm453_vm3, %v455_v47, %v451_v48  ;;  %859 = vrcp.f32 %v391_v50  ;;  %vm465_vm6 = vmor %vm463_vm5, %vm464_vm4  ;;  %v484_v5 = vand.u32 2147483648, %v391_v50  ;;  %vm478_vm12 = vweird.f32 %v391_v50 }
 0x2c5   :  { %v457_v53 = vmul.f32 %v1144_v34, %v456_v51  ;;  %v460_v21 = vsub.f32 1.0, %v459_v25  ;;  %v482_v10 = vand.u32 2147483647, %v391_v50  ;;  %v500_v17 = vor.u32 1.1754944e-38, %v499_v4  ;;  %v830_v25 = vld [vmem:[%s1232_s5] ss:$0 sm:$0xff] }
 0x2c6   :  { %v485_v18 = vor.u32 1.1754944e-38, %v484_v5  ;;  %vm498_vm14 = vcmp.eq.f32.partialorder %v497_v8, 8.507059e+37  ;;  %s999_s5 = smov [#allocation10]  }
 0x2c7   :  { %787 = vmatmul.msk.f32.gmra.mxu2 %vm325_vm1, %v457_v53  ;;  %v461_v56 = vmul.f32 %v856_v52, %v460_v21  ;;  %vm483_vm15 = vcmp.eq.f32.partialorder %v482_v10, 8.507059e+37  ;;  %s743_s20 = sshll.u32 %s999_s5, 4  ;;  %s744_s20 = int_to_ptr.vmem [resolvable:$true] %s743_s20 }
 0x2c8   :  { %v858_v19 = vpop.eup %857 }
 0x2c9   :  { %v489_v57 = vmul.f32 %v858_v19, %v394_v49  ;;  %v462_v23 = vadd.f32 %v856_v52, %v461_v56  ;;  %vm494_vm8 = vweird.f32 %v858_v19 }
 0x2ca   :  { %v860_v55 = vpop.eup %859  ;;  %vm1182_vm11 = vmor %vm493_vm10, %vm494_vm8 }
 0x2cb   :  { %v474_v58 = vmul.f32 %v860_v55, %v391_v50  ;;  %v490_v24 = vsub.f32 1.0, %v489_v57  ;;  %v466_v34 = vsel %vm465_vm6, %v856_v52, %v462_v23  ;;  %vm479_vm9 = vweird.f32 %v860_v55 }
 0x2cc   :  { %v471_v0 = vsel %vm468_vm7, %v470_v62, %v466_v34  ;;  %vm1187_vm13 = vmor %vm478_vm12, %vm479_vm9 }
 0x2cd   :  { %v475_v59 = vsub.f32 1.0, %v474_v58  ;;  %v491_v26 = vmul.f32 %v858_v19, %v490_v24  ;;  %v472_v9 = vmul.f32 %v1148_v41, %v471_v0  ;;  %v659_v41 = vld [vmem:[#allocation8 + $0x8] sm:$0xff] }
 0x2ce   :  { %704 = vmatpush.msra.mxu3 %v659_v41 }
 0x2cf   :  { %v476_v28 = vmul.f32 %v860_v55, %v475_v59  ;;  %v492_v2 = vadd.f32 %v858_v19, %v491_v26 }
 0x2d0   :  { %705 = vmatpush.msra.mxu3 %v658_v46 }
 0x2d1   :  { %v477_v3 = vadd.f32 %v860_v55, %v476_v28  ;;  %v496_v15 = vsel %vm1182_vm11, %v858_v19, %v492_v2 }
 0x2d2   :  { %v501_v22 = vsel %vm498_vm14, %v500_v17, %v496_v15 }
 0x2d3   :  { %v481_v16 = vsel %vm1187_vm13, %v860_v55, %v477_v3  ;;  %v502_v31 = vmul.f32 %v1154_v44, %v501_v22 }
 0x2d4   :  { %v486_v29 = vsel %vm483_vm15, %v485_v18, %v481_v16 }
 0x2d5   :  { %v487_v32 = vmul.f32 %v1152_v43, %v486_v29 }
 0x2db   :  { %v821_v63 = vpop.permute.xlu1 %820 }
 0x2dc   :  { %v822_v1 = vunpack.i.l.bf16 %v821_v63  ;;  %v823_v6 = vunpack.i.h.bf16 %v821_v63 }
 0x2de   :  { %614 = vmatpush.msrb.mxu1 %v822_v1 }
 0x2e0   :  { %615 = vmatpush.msrb.mxu1 %v823_v6 }
 0x2e1   :  { %788 = vmatmul.msk.f32.vlgmr.msrb.gmra.mxu1 %vm325_vm1, %v472_v9 }
 0x2e3   :  { %v826_v20 = vpop.permute.xlu1 %825 }
 0x2e4   :  { %v827_v27 = vunpack.i.l.bf16 %v826_v20  ;;  %v828_v30 = vunpack.i.h.bf16 %v826_v20 }
 0x2e6   :  { %649 = vmatpush.msrb.mxu2 %v827_v27 }
 0x2e8   :  { %650 = vmatpush.msrb.mxu2 %v828_v30 }
 0x2e9   :  { %789 = vmatmul.msk.f32.gmra.mxu1 %vm325_vm1, %v487_v32  ;;  %790 = vmatmul.msk.f32.vlgmr.msrb.gmra.mxu2 %vm325_vm1, %v502_v31 }
 0x2ec   :  { %v397_v14 = vpop.xlane.xlu2 %396 }
 0x2ed   :  { %861 = vrcp.f32 %v397_v14  ;;  %v514_v37 = vand.u32 2147483648, %v397_v14  ;;  %v512_v39 = vand.u32 2147483647, %v397_v14  ;;  %vm508_vm3 = vweird.f32 %v397_v14 }
 0x2ef   :  { %v515_v44 = vor.u32 1.1754944e-38, %v514_v37  ;;  %vm513_vm5 = vcmp.eq.f32.partialorder %v512_v39, 8.507059e+37 }
 0x2f3   :  { %v862_v33 = vpop.eup %861 }
 0x2f4   :  { %v504_v35 = vmul.f32 %v862_v33, %v397_v14  ;;  %vm509_vm2 = vweird.f32 %v862_v33 }
 0x2f5   :  { %vm510_vm4 = vmor %vm508_vm3, %vm509_vm2 }
 0x2f6   :  { %v505_v36 = vsub.f32 1.0, %v504_v35 }
 0x2f8   :  { %v506_v38 = vmul.f32 %v862_v33, %v505_v36 }
 0x2fa   :  { %v507_v40 = vadd.f32 %v862_v33, %v506_v38 }
 0x2fc   :  { %v511_v43 = vsel %vm510_vm4, %v862_v33, %v507_v40 }
 0x2fd   :  { %v516_v42 = vsel %vm513_vm5, %v515_v44, %v511_v43 }
 0x2fe   :  { %v517_v45 = vmul.f32 %v1170_v54, %v516_v42 }
 0x300   :  { %791 = vmatmul.msk.f32.gmra.mxu2 %vm325_vm1, %v517_v45 }
 0x32c   :  { %v547_v47 = vpop.f32.mrf.mxu2 }
 0x32d   :  { %792 = vmatmul.msk.f32.vlgmr.msra.gmra.mxu3 %vm103_vm0, %v547_v47 }
 0x334   :  { %v550_v48 = vpop.f32.mrf.mxu2 }
 0x335   :  { %793 = vmatmul.msk.f32.gmra.mxu3 %vm103_vm0, %v550_v48 }
 0x342   :  { %v582_v49 = vpop.f32.mrf.mxu2 }
 0x343   :  { %794 = vmatmul.msk.f32.gmra.mxu3 %vm103_vm0, %v582_v49 }
 0x34a   :  { %v585_v50 = vpop.f32.mrf.mxu2 }
 0x34b   :  { %795 = vmatmul.msk.f32.gmra.mxu3 %vm103_vm0, %v585_v50 }
 0x35e   :  { %v617_v51 = vpop.f32.mrf.mxu1 }
 0x35f   :  { %796 = vmatmul.msk.f32.gmra.mxu3 %vm103_vm0, %v617_v51 }
 0x366   :  { %v620_v54 = vpop.f32.mrf.mxu1 }
 0x367   :  { %797 = vmatmul.msk.f32.gmra.mxu3 %vm103_vm0, %v620_v54 }
 0x36c   :  { %v652_v52 = vpop.f32.mrf.mxu2 }
 0x36f   :  { %798 = vmatmul.msk.f32.gmra.mxu3 %vm103_vm0, %v652_v52 }
 0x383   :  { %v655_v53 = vpop.f32.mrf.mxu2 }
 0x384   :  { %799 = vmatmul.msk.f32.gmra.mxu3 %vm103_vm0, %v655_v53 }
 0x3b0   :  { %v707_v19 = vpop.f32.mrf.mxu3 }
 0x3b1   :  { %v708_v21 = vadd.f32 %v830_v25, %v707_v19 }
 0x3b3   :  { %731 = vst.msk [vmem:[#allocation10] sm:$0xff] %vm103_vm0, %v708_v21 }
 0x3b8   :  { %v710_v55 = vpop.f32.mrf.mxu3 }
 0x3b9   :  { %v711_v56 = vadd.f32 %v830_v25, %v710_v55 }
 0x3bb   :  { %732 = vst.msk [vmem:[#allocation10 + $0x8] sm:$0xff] %vm103_vm0, %v711_v56 }
 0x3c6   :  { %v713_v57 = vpop.f32.mrf.mxu3 }
 0x3c7   :  { %v714_v58 = vadd.f32 %v830_v25, %v713_v57 }
 0x3c9   :  { %733 = vst.msk [vmem:[#allocation10 + $0x10] sm:$0xff] %vm103_vm0, %v714_v58 }
 0x3ce   :  { %v716_v23 = vpop.f32.mrf.mxu3 }
 0x3cf   :  { %v717_v24 = vadd.f32 %v830_v25, %v716_v23 }
 0x3d1   :  { %734 = vst.msk [vmem:[#allocation10 + $0x18] sm:$0xff] %vm103_vm0, %v717_v24 }
 0x3e2   :  { %v719_v59 = vpop.f32.mrf.mxu3 }
 0x3e3   :  { %v720_v60 = vadd.f32 %v830_v25, %v719_v59 }
 0x3e5   :  { %735 = vst.msk [vmem:[#allocation10 + $0x20] sm:$0xff] %vm103_vm0, %v720_v60 }
 0x3ea   :  { %v722_v61 = vpop.f32.mrf.mxu3 }
 0x3eb   :  { %v723_v34 = vadd.f32 %v830_v25, %v722_v61 }
 0x3ed   :  { %736 = vst.msk [vmem:[#allocation10 + $0x28] sm:$0xff] %vm103_vm0, %v723_v34 }
 0x3f2   :  { %v725_v26 = vpop.f32.mrf.mxu3 }
 0x3f3   :  { %v726_v28 = vadd.f32 %v830_v25, %v725_v26 }
 0x3f5   :  { %737 = vst.msk [vmem:[#allocation10 + $0x30] sm:$0xff] %vm103_vm0, %v726_v28 }
 0x407   :  { %v728_v62 = vpop.f32.mrf.mxu3 }
 0x408   :  { %v729_v63 = vadd.f32 %v830_v25, %v728_v62 }
 0x40a   :  { %738 = vst.msk [vmem:[#allocation10 + $0x38] sm:$0xff] %vm103_vm0, %v729_v63 }
 0x40b   :  { %751 = dma.vmem_to_hbm [thread:$0]  %s744_s20, 1024, %s746_s23, [#allocation4], %s992_s29, %s992_s29, %s993_s30  }
 0x40c   :  { %989 = dma.done.wait [#allocation4], 1024  }
 0x40d   :  { %990 = vsyncadd [#allocation4], 4294966272 }
 0x40e   :  { %756 = vsyncpa [#allocation3], 1 }
 0x40f   :  { %757 = vsyncpa [#allocation6], 1 }
 0x410   :  { %758 = vsyncpa [#allocation9], 1 }
 0x411   :  { %759 = vsyncpa [#allocation4], 1 }

</bundles_post_ra>
